<compile_context>
chip_gen: v7x
topology: tpu7x:2x2x1
jax: 0.10.0
libtpu: 0.0.40
codegen_flags: <defaults>
</compile_context>

<pallas_src>
import functools

import jax
import jax.numpy as jnp
from jax.experimental import pallas as pl
from jax.experimental.pallas import tpu as pltpu


def _round_up(x, m):
    return ((x + m - 1) // m) * m


def _simam_kernel(x_ref, o_ref, *, inv_hw, inv_n, e_lambda):
    # x_ref: (tile_r, hw) block in VMEM; one row per (b, c) channel, lanes are
    # the true h*w spatial elements (no lane padding).
    x = x_ref[...].astype(jnp.float32)

    # Two-pass moments over the full row. s is a sum of squares, hence >= 0 by
    # construction (no catastrophic-cancellation clamp needed).
    mu = jnp.sum(x, axis=-1, keepdims=True) * inv_hw
    d = x - mu
    d2 = d * d
    s = jnp.sum(d2, axis=-1, keepdims=True)

    # y = d2 / (4 * (s / n + e_lambda)) + 0.5
    # approx=True -> EUP vrcp (separate bundle slot, ~12-bit accurate; the
    # denominator is a per-row column so the precision impact is negligible).
    inv_denom = pl.reciprocal(4.0 * (s * inv_n + e_lambda), approx=True)
    y = d2 * inv_denom + 0.5

    # x * sigmoid(y): the sigmoid divide also goes to the EUP slot instead of
    # VALU Newton iterations; exp already lives on the EUP.
    sig = pl.reciprocal(1.0 + jnp.exp(-y), approx=True)
    o_ref[...] = (x * sig).astype(o_ref.dtype)


def _pick_tiling(bc, hw, itemsize):
    """Row-tile size and grid length for the (bc, hw) view."""
    # Sublane packing: 8 rows per vreg for f32, 16 for bf16.
    packing = 8 * max(1, 4 // itemsize)
    row_bytes = hw * itemsize

    # Per-buffer HBM block target.  Budget per grid step is roughly
    #   2*in_block + 2*out_block (double-buffered) + ~2 f32 blocks of
    #   elementwise temporaries (bf16 upcast case)
    # -> ~1 MiB blocks keep v5-class chips (16 MiB default scoped VMEM) safe,
    #    ~2 MiB blocks (~16 MiB total) fit v6e/v7x's 32 MiB default scoped
    #    VMEM with headroom against v7x's 64 MiB physical VMEM.
    try:
        kind = jax.devices()[0].device_kind.lower()
    except Exception:  # defensive: fall back to the conservative budget
        kind = ""
    small_vmem = any(v in kind for v in ("v2", "v3", "v4", "v5"))
    target_block_bytes = (1 << 20) if small_vmem else (2 << 20)

    tile_r = max(packing, (target_block_bytes // row_bytes) // packing * packing)
    if tile_r >= bc:
        # Whole array in one block; "equal to full array dim" exempts the
        # sublane dim from the multiple-of-8/16 requirement.
        tile_r = bc
    n_blocks = pl.cdiv(bc, tile_r)

    # v7x megacore: dimension_semantics=("parallel",) only helps if the grid
    # has >= 2 steps, so split a single block in two when there is enough
    # work.  Near-zero cost on single-TC v5e/v6e (one extra ~0.35 us step).
    if n_blocks == 1 and bc >= 2 * packing:
        tile_r = _round_up(pl.cdiv(bc, 2), packing)
        n_blocks = pl.cdiv(bc, tile_r)

    return tile_r, n_blocks


def simam(x, e_lambda=1e-4):
    """SimAM forward. x: (b, c, h, w), any float dtype."""
    b, c, h, w = x.shape
    hw = h * w
    bc = b * c
    # PyTorch uses n = h*w - 1 (which NaNs for 1x1 maps); guard the division.
    n = max(hw - 1, 1)

    itemsize = jnp.dtype(x.dtype).itemsize
    tile_r, n_blocks = _pick_tiling(bc, hw, itemsize)

    # No wrapper-side padding or slicing: last block dim == hw (full-dim
    # exemption from the 128-lane rule); a short final row block is a partial
    # edge block whose out-of-bounds rows are discarded on store.  Each row's
    # reduction is independent, so edge-padding rows never pollute valid rows.
    x2d = x.reshape(bc, hw)

    kernel = functools.partial(
        _simam_kernel,
        inv_hw=1.0 / float(hw),
        inv_n=1.0 / float(n),
        e_lambda=float(e_lambda),
    )

    elems = bc * hw
    cost = pl.CostEstimate(
        flops=10 * elems,          # elementwise ops + two row reductions
        transcendentals=elems,     # one exp per element (sigmoid)
        bytes_accessed=2 * elems * itemsize,
    )

    out2d = pl.pallas_call(
        kernel,
        out_shape=jax.ShapeDtypeStruct((bc, hw), x.dtype),
        grid=(n_blocks,),
        in_specs=[pl.BlockSpec((tile_r, hw), lambda i: (i, 0))],
        out_specs=pl.BlockSpec((tile_r, hw), lambda i: (i, 0)),
        compiler_params=pltpu.CompilerParams(
            dimension_semantics=("parallel",)
        ),
        cost_estimate=cost,
        # Same shape/dtype in and out: let XLA donate the input HBM buffer.
        input_output_aliases={0: 0},
    )(x2d)

    return out2d.reshape(b, c, h, w)


def _simam_ref(x, e_lambda=1e-4):
    x = x.astype(jnp.float32)
    b, c, h, w = x.shape
    n = w * h - 1
    mu = jnp.mean(x, axis=(2, 3), keepdims=True)
    d2 = (x - mu) ** 2
    s = jnp.sum(d2, axis=(2, 3), keepdims=True)
    y = d2 / (4.0 * (s / n + e_lambda)) + 0.5
    return x * jax.nn.sigmoid(y)


if __name__ == "__main__":
    key = jax.random.PRNGKey(0)

    # Main test: (2, 4, 16, 16) f32 — hw already a multiple of 128.
    b, c, h, w = 2, 4, 16, 16
    x = jax.random.normal(key, (b, c, h, w), dtype=jnp.float32)
    out = jax.block_until_ready(simam(x))
    ref = _simam_ref(x)
    assert out.shape == (b, c, h, w)
    # Tolerance accounts for the approximate (EUP) reciprocals in the kernel.
    assert jnp.allclose(out, ref, atol=5e-3, rtol=5e-3), "mismatch vs reference (f32)"

    # Non-128-aligned spatial map: hw=25 stays the full (unpadded) lane dim.
    k2 = jax.random.PRNGKey(1)
    x2 = jax.random.normal(k2, (2, 3, 5, 5), dtype=jnp.float32)
    out2 = jax.block_until_ready(simam(x2))
    ref2 = _simam_ref(x2)
    assert jnp.allclose(out2, ref2, atol=5e-3, rtol=5e-3), "mismatch vs reference (hw=25)"

    # Multi-block path with a partial edge row block (bc=132 -> 2 blocks).
    k3 = jax.random.PRNGKey(2)
    x3 = jax.random.normal(k3, (4, 33, 16, 16), dtype=jnp.float32)
    out3 = jax.block_until_ready(simam(x3))
    ref3 = _simam_ref(x3)
    assert jnp.allclose(out3, ref3, atol=5e-3, rtol=5e-3), "mismatch vs reference (edge block)"

    # bf16 path: exercises sublane packing / full-dim row block and f32 upcast.
    x4 = jax.random.normal(key, (b, c, h, w), dtype=jnp.bfloat16)
    out4 = jax.block_until_ready(simam(x4))
    ref4 = _simam_ref(x4).astype(jnp.bfloat16).astype(jnp.float32)
    assert jnp.allclose(out4.astype(jnp.float32), ref4, atol=3e-2, rtol=3e-2), \
        "mismatch vs reference (bf16)"

    print("KERNEL_OK")
</pallas_src>

<mosaic_0001>
module attributes {stable_mosaic.version = 11 : i64} {
  func.func @_simam_kernel(%arg0: i32, %arg1: memref<8x256xf32, #tpu.memory_space<vmem>>, %arg2: memref<8x256xf32, #tpu.memory_space<vmem>>) attributes {dimension_semantics = [#tpu.dimension_semantics<parallel>], iteration_bounds = array<i64: 1>, scalar_prefetch = 0 : i64, scratch_operands = 0 : i64, tpu.core_type = #tpu.core_type<tc>, window_params = [{transform_indices = @transform_0, window_bounds = array<i64: 8, 256>}, {transform_indices = @transform_1, window_bounds = array<i64: 8, 256>}]} {
    %c0 = arith.constant 0 : index
    %c0_0 = arith.constant 0 : index
    %0 = vector.load %arg1[%c0, %c0_0] : memref<8x256xf32, #tpu.memory_space<vmem>>, vector<8x256xf32>
    %cst = arith.constant dense<0.000000e+00> : vector<8xf32>
    %1 = vector.multi_reduction <add>, %0, %cst [1] : vector<8x256xf32> to vector<8xf32>
    %2 = vector.shape_cast %1 : vector<8xf32> to vector<8x1xf32>
    %cst_1 = arith.constant 3.906250e-03 : f32
    %3 = vector.broadcast %cst_1 : f32 to vector<8x1xf32>
    %4 = arith.mulf %2, %3 : vector<8x1xf32>
    %5 = vector.broadcast %4 : vector<8x1xf32> to vector<8x256xf32>
    %6 = arith.subf %0, %5 : vector<8x256xf32>
    %7 = arith.mulf %6, %6 : vector<8x256xf32>
    %cst_2 = arith.constant dense<0.000000e+00> : vector<8xf32>
    %8 = vector.multi_reduction <add>, %7, %cst_2 [1] : vector<8x256xf32> to vector<8xf32>
    %9 = vector.shape_cast %8 : vector<8xf32> to vector<8x1xf32>
    %cst_3 = arith.constant 0.00392156886 : f32
    %10 = vector.broadcast %cst_3 : f32 to vector<8x1xf32>
    %11 = arith.mulf %9, %10 : vector<8x1xf32>
    %cst_4 = arith.constant 9.99999974E-5 : f32
    %12 = vector.broadcast %cst_4 : f32 to vector<8x1xf32>
    %13 = arith.addf %11, %12 : vector<8x1xf32>
    %cst_5 = arith.constant 4.000000e+00 : f32
    %14 = vector.broadcast %cst_5 : f32 to vector<8x1xf32>
    %15 = arith.mulf %14, %13 : vector<8x1xf32>
    %16 = tpu.reciprocal %15 {approx = true} : vector<8x1xf32> -> vector<8x1xf32>
    %17 = vector.broadcast %16 : vector<8x1xf32> to vector<8x256xf32>
    %18 = arith.mulf %7, %17 : vector<8x256xf32>
    %cst_6 = arith.constant 5.000000e-01 : f32
    %19 = vector.broadcast %cst_6 : f32 to vector<8x256xf32>
    %20 = arith.addf %18, %19 : vector<8x256xf32>
    %cst_7 = arith.constant 0.000000e+00 : f32
    %21 = vector.broadcast %cst_7 : f32 to vector<8x256xf32>
    %22 = arith.subf %21, %20 : vector<8x256xf32>
    %23 = math.exp %22 : vector<8x256xf32>
    %cst_8 = arith.constant 1.000000e+00 : f32
    %24 = vector.broadcast %cst_8 : f32 to vector<8x256xf32>
    %25 = arith.addf %24, %23 : vector<8x256xf32>
    %26 = tpu.reciprocal %25 {approx = true} : vector<8x256xf32> -> vector<8x256xf32>
    %27 = arith.mulf %0, %26 : vector<8x256xf32>
    %c0_9 = arith.constant 0 : index
    %c0_10 = arith.constant 0 : index
    %28 = vector.load %arg2[%c0_9, %c0_10] : memref<8x256xf32, #tpu.memory_space<vmem>>, vector<8x256xf32>
    tpu.vector_store %arg2[%c0_9, %c0_10], %27 {strides = array<i32>} : memref<8x256xf32, #tpu.memory_space<vmem>>, vector<8x256xf32>,
    return
  }
  func.func @transform_0(%arg0: i32) -> (i32, i32) {
    %c0_i32 = arith.constant 0 : i32
    %c0_i32_0 = arith.constant 0 : i32
    return %arg0, %c0_i32 : i32, i32
  }
  func.func @transform_1(%arg0: i32) -> (i32, i32) {
    %c0_i32 = arith.constant 0 : i32
    %c0_i32_0 = arith.constant 0 : i32
    return %arg0, %c0_i32 : i32, i32
  }
}

</mosaic_0001>

<bundles_post_ra>
// kernel: tpu_custom_call.1
= control target key start
LH: loop header
LB: loop body
LE: loop exit
PB: predicated region body
PF: predicated region fallthrough
CT: control target
= control target key end

     0   :  { %6 = vsyncpa [#allocation3], 0  ;;  %s167_s0 = inlined_call_operand.hbm [shape: f32[8,256], index: 0, kind: input, shape index: {}, may-alias: {0,1}]   ;;  %s168_s1 = inlined_call_operand.hbm [shape: f32[8,256], index: 1, kind: output, shape index: {}, may-alias: {0,1}]  }
   0x1   :  { %7 = vsyncpa [#allocation4], 0  ;;  %s131_s6 = smov [#allocation2]   ;;  %s83_s10 = scalar_lea.hbm %s167_s0, 256 }
   0x2   :  { %s14_s7 = sshll.u32 %s131_s6, 4  ;;  %p84_p0 = scmp.ne.s32.totalorder %s167_s0, %s83_s10  ;;  %s15_s7 = int_to_ptr.vmem [resolvable:$true] %s14_s7 }
   0x3   :  { %p87_p1 = scmp.lt.u32.totalorder %s83_s10, %s167_s0 }
   0x5   :  { %p89_p2 = pnand %p87_p1, %p84_p0 }
   0x7   :  { %92 = shalt.err (!%p89_p2)
}
   0x8   :  { %s93_s15 = scalar_lea.vmem %s15_s7, 256  ;;  %p98_p4 = scmp.lt.s32.totalorder %s15_s7, %s15_s7 }
   0x9   :  { %p94_p3 = scmp.ne.s32.totalorder %s15_s7, %s93_s15  ;;  %p99_p5 = scmp.lt.s32.totalorder %s93_s15, %s93_s15 }
   0xb   :  { %p100_p6 = por %p99_p5, %p98_p4 }
   0xd   :  { %p101_p7 = pnand %p100_p6, %p94_p3 }
   0xf   :  { %104 = shalt.err (!%p101_p7)
}
  0x10   :  { %17 = dma.hbm_to_vmem [thread:$0]  %s167_s0, 256, %s15_s7, [#allocation3]  }
  0x11   :  { %127 = dma.done.wait [#allocation3], 256  }
  0x12   :  { %128 = vsyncadd [#allocation3], 4294967040  ;;  %v21_v0 = vld [vmem:[#allocation2] sm:$0xff]  ;;  %v22_v1 = vld [vmem:[#allocation2 + $0x8] sm:$0xff]  ;;  %s132_s0 = smov [#allocation5]  }
  0x13   :  { %v23_v2 = vadd.f32 %v22_v1, %v21_v0  ;;  %s62_s18 = sshll.u32 %s132_s0, 4  ;;  %s63_s18 = int_to_ptr.vmem [resolvable:$true] %s62_s18 }
  0x14   :  { %s105_s19 = scalar_lea.vmem %s63_s18, 256  ;;  %p110_p9 = scmp.lt.s32.totalorder %s63_s18, %s63_s18 }
  0x15   :  { %24 = vadd.xlane.f32.xlu0 %v23_v2  ;;  %p106_p8 = scmp.ne.s32.totalorder %s63_s18, %s105_s19  ;;  %p111_p10 = scmp.lt.s32.totalorder %s105_s19, %s105_s19 }
  0x17   :  { %p112_p11 = por %p111_p10, %p110_p9 }
  0x19   :  { %p113_p12 = pnand %p112_p11, %p106_p8 }
  0xa2   :  { %v25_v3 = vpop.xlane.xlu0 %24 }
  0xa3   :  { %v26_v4 = vmul.f32 0.00390625, %v25_v3 }
  0xa5   :  { %v27_v5 = vsub.f32 %v21_v0, %v26_v4  ;;  %v28_v6 = vsub.f32 %v22_v1, %v26_v4 }
  0xa7   :  { %v29_v7 = vmul.f32 %v27_v5, %v27_v5  ;;  %v30_v8 = vmul.f32 %v28_v6, %v28_v6 }
  0xa9   :  { %v31_v9 = vadd.f32 %v30_v8, %v29_v7 }
  0xab   :  { %32 = vadd.xlane.f32.xlu0 %v31_v9 }
 0x138   :  { %v33_v10 = vpop.xlane.xlu0 %32 }
 0x139   :  { %v34_v11 = vmul.f32 0.003921569, %v33_v10 }
 0x13b   :  { %v35_v12 = vadd.f32 0.0001, %v34_v11 }
 0x13d   :  { %v36_v13 = vmul.f32 4.0, %v35_v12 }
 0x13f   :  { %73 = vrcp.f32 %v36_v13 }
 0x149   :  { %v74_v14 = vpop.eup %73 }
 0x14a   :  { %v38_v15 = vmul.f32 %v74_v14, %v29_v7  ;;  %v39_v16 = vmul.f32 %v74_v14, %v30_v8 }
 0x14c   :  { %v40_v17 = vadd.f32 0.5, %v38_v15  ;;  %v41_v18 = vadd.f32 0.5, %v39_v16 }
 0x14e   :  { %v42_v19 = vsub.f32 0.0, %v40_v17  ;;  %v43_v20 = vsub.f32 0.0, %v41_v18 }
 0x150   :  { %v44_v21 = vmul.f32 1.442695, %v42_v19  ;;  %v46_v22 = vmul.f32 1.442695, %v43_v20 }
 0x152   :  { %75 = vpow2.f32 %v44_v21 }
 0x153   :  { %77 = vpow2.f32 %v46_v22 }
 0x15c   :  { %v76_v23 = vpop.eup %75 }
 0x15d   :  { %v78_v24 = vpop.eup %77  ;;  %v48_v25 = vadd.f32 1.0, %v76_v23 }
 0x15e   :  { %v49_v26 = vadd.f32 1.0, %v78_v24 }
 0x15f   :  { %79 = vrcp.f32 %v48_v25 }
 0x160   :  { %81 = vrcp.f32 %v49_v26 }
 0x169   :  { %v80_v27 = vpop.eup %79 }
 0x16a   :  { %v82_v28 = vpop.eup %81  ;;  %v52_v29 = vmul.f32 %v80_v27, %v21_v0 }
 0x16b   :  { %v53_v30 = vmul.f32 %v82_v28, %v22_v1 }
 0x16c   :  { %54 = vst [vmem:[#allocation5] sm:$0xff] %v52_v29 }
 0x16d   :  { %55 = vst [vmem:[#allocation5 + $0x8] sm:$0xff] %v53_v30 }
 0x16e   :  { %116 = shalt.err (!%p113_p12)
}
 0x16f   :  { %s117_s22 = scalar_lea.hbm %s168_s1, 256 }
 0x170   :  { %p118_p13 = scmp.ne.s32.totalorder %s168_s1, %s117_s22  ;;  %p121_p0 = scmp.lt.u32.totalorder %s117_s22, %s168_s1 }
 0x172   :  { %p123_p1 = pnand %p121_p0, %p118_p13 }
 0x174   :  { %126 = shalt.err (!%p123_p1)
}
 0x175   :  { %65 = dma.vmem_to_hbm [thread:$0]  %s63_s18, 256, %s168_s1, [#allocation4]  }
 0x176   :  { %129 = dma.done.wait [#allocation4], 256  }
 0x177   :  { %130 = vsyncadd [#allocation4], 4294967040 }
 0x178   :  { %69 = vsyncpa [#allocation3], 1 }
 0x179   :  { %70 = vsyncpa [#allocation4], 1 }

</bundles_post_ra>
